<compile_context>
chip_gen: v5e
topology: v5e:2x2
jax: 0.10.0
libtpu: 0.0.40
codegen_flags: <defaults>
</compile_context>

<pallas_src>
import functools

import jax
import jax.numpy as jnp
from jax.experimental import pallas as pl
from jax.experimental.pallas import tpu as pltpu


_LANE = 128
_VMEM_LIMIT = 48 * 1024 * 1024  # fits v7x 64 MiB physical VMEM, raises v5e default


def _round_up(v, m):
    return (v + m - 1) // m * m


def _pick_row_tile(n_rows, n_cols, max_rows=256, bytes_per_elem=2, budget=16 << 20):
    """Row-tile so one bf16 adj tile stays well under the VMEM budget."""
    if n_rows <= max_rows:
        return n_rows
    tm = budget // max(1, n_cols * bytes_per_elem)
    return max(8, min(max_rows, (tm // 8) * 8))


# ----------------------------------------------------------------------------
# GCN layer kernel:  out = adj_rows @ (x @ w) + b  (optionally relu)
#   - grid over row tiles of adj_rows / out (BlockSpec double-buffered adj DMA)
#   - support (= x @ w) computed once at step 0 into a bf16 VMEM scratch
#   - bf16 MXU operands, f32 accumulation, lane-padded (128) output
# ----------------------------------------------------------------------------
def _gcn_layer_kernel(x_ref, w_ref, adj_ref, b_ref, out_ref, support_ref, *, relu):
    @pl.when(pl.program_id(0) == 0)
    def _init_support():
        s = jnp.dot(
            x_ref[...].astype(jnp.bfloat16),
            w_ref[...].astype(jnp.bfloat16),
            preferred_element_type=jnp.float32,
        )
        support_ref[...] = s.astype(jnp.bfloat16)

    out = jnp.dot(adj_ref[...], support_ref[...], preferred_element_type=jnp.float32)
    out = out + b_ref[...]
    if relu:
        out = jnp.maximum(out, 0.0)
    out_ref[...] = out


def gcn_layer(x, w, adj_rows, b, relu=False):
    """out = adj_rows @ (x @ w) + b, adj_rows: (NR, N) with N == x.shape[0]."""
    nr, n = adj_rows.shape
    f = x.shape[1]
    c = w.shape[1]
    cpad = _round_up(c, _LANE)

    w_p = jnp.pad(w, ((0, 0), (0, cpad - c)))
    b_p = jnp.pad(b.reshape(1, -1), ((0, 0), (0, cpad - c)))

    tm = _pick_row_tile(nr, n)
    nrp = _round_up(nr, tm)
    adj_p = adj_rows if nrp == nr else jnp.pad(adj_rows, ((0, nrp - nr), (0, 0)))
    adj_p = adj_p.astype(jnp.bfloat16)   # halves HBM traffic on the dominant stream

    kernel = functools.partial(_gcn_layer_kernel, relu=relu)
    out = pl.pallas_call(
        kernel,
        out_shape=jax.ShapeDtypeStruct((nrp, cpad), jnp.float32),
        grid=(nrp // tm,),
        in_specs=[
            pl.BlockSpec((n, f), lambda i: (0, 0)),        # x     (resident)
            pl.BlockSpec((f, cpad), lambda i: (0, 0)),     # w     (resident)
            pl.BlockSpec((tm, n), lambda i: (i, 0)),       # adj row tile (streamed)
            pl.BlockSpec((1, cpad), lambda i: (0, 0)),     # bias
        ],
        out_specs=pl.BlockSpec((tm, cpad), lambda i: (i, 0)),
        scratch_shapes=[pltpu.VMEM((n, cpad), jnp.bfloat16)],
        # "arbitrary": step-0 support init is shared across row tiles.
        # TODO(synk): split support into its own tiny stage to allow
        # dimension_semantics=("parallel",) for v7x megacore sharding.
        compiler_params=pltpu.CompilerParams(
            dimension_semantics=("arbitrary",),
            vmem_limit_bytes=_VMEM_LIMIT,
        ),
    )(x.astype(jnp.float32), w_p, adj_p, b_p)
    return out[:nr, :c]


# ----------------------------------------------------------------------------
# Plain linear kernel (MLP classifier path):  out = x @ w + b
# ----------------------------------------------------------------------------
def _linear_kernel(x_ref, w_ref, b_ref, out_ref):
    out = jnp.dot(
        x_ref[...].astype(jnp.bfloat16),
        w_ref[...].astype(jnp.bfloat16),
        preferred_element_type=jnp.float32,
    )
    out_ref[...] = out + b_ref[...]


def linear(x, w, b):
    nr, f = x.shape
    c = w.shape[1]
    cpad = _round_up(c, _LANE)
    w_p = jnp.pad(w, ((0, 0), (0, cpad - c)))
    b_p = jnp.pad(b.reshape(1, -1), ((0, 0), (0, cpad - c)))

    tm = _pick_row_tile(nr, f)
    nrp = _round_up(nr, tm)
    x_p = x if nrp == nr else jnp.pad(x, ((0, nrp - nr), (0, 0)))

    out = pl.pallas_call(
        _linear_kernel,
        out_shape=jax.ShapeDtypeStruct((nrp, cpad), jnp.float32),
        grid=(nrp // tm,),
        in_specs=[
            pl.BlockSpec((tm, f), lambda i: (i, 0)),
            pl.BlockSpec((f, cpad), lambda i: (0, 0)),
            pl.BlockSpec((1, cpad), lambda i: (0, 0)),
        ],
        out_specs=pl.BlockSpec((tm, cpad), lambda i: (i, 0)),
        compiler_params=pltpu.CompilerParams(
            dimension_semantics=("parallel",),
            vmem_limit_bytes=_VMEM_LIMIT,
        ),
    )(x_p, w_p, b_p)
    return out[:nr, :c]


# ----------------------------------------------------------------------------
# Fused loss kernels
# ----------------------------------------------------------------------------
def _ce_rowwise(logits, onehot):
    """Per-row cross-entropy (M, 1), numerically stable."""
    mx = jnp.max(logits, axis=-1, keepdims=True)
    lse = jnp.log(jnp.sum(jnp.exp(logits - mx), axis=-1, keepdims=True)) + mx
    picked = jnp.sum(onehot * logits, axis=-1, keepdims=True)
    return lse - picked


def _focal_kernel(logits_ref, onehot_ref, rw_ref, out_ref, *, gamma, alpha,
                  use_class_weight):
    """Full LTE4G focal loss:  (1 - exp(-CE))^gamma * [alpha*CE | CE_weighted]."""
    logits = logits_ref[...]
    onehot = onehot_ref[...]
    m_rows = logits.shape[0]

    ce = _ce_rowwise(logits, onehot)                       # (M, 1)
    ce_mean = jnp.sum(ce, keepdims=True) * (1.0 / m_rows)  # (1, 1)
    pt = jnp.exp(-ce_mean)
    one_minus_pt = 1.0 - pt

    g = float(gamma)
    if g == int(g) and g >= 0:                 # avoid lax.pow inside the kernel
        focal = jnp.ones_like(one_minus_pt)
        for _ in range(int(g)):
            focal = focal * one_minus_pt
    else:
        focal = jnp.exp(g * jnp.log(jnp.maximum(one_minus_pt, 1e-30)))

    if use_class_weight:
        rw = rw_ref[...]                                   # (M, 1) per-row weight
        den = jnp.sum(rw, keepdims=True)
        ce_w = jnp.sum(rw * ce, keepdims=True) * pl.reciprocal(den, approx=True)
        out_ref[...] = focal * ce_w
    else:
        out_ref[...] = focal * (alpha * ce_mean)


def focal_loss(logits, labels, num_classes, gamma, alpha, class_weight_vec=None):
    m = logits.shape[0]
    onehot = jax.nn.one_hot(labels, num_classes, dtype=jnp.float32)
    use_w = class_weight_vec is not None
    if use_w:
        rw = class_weight_vec[labels].reshape(m, 1).astype(jnp.float32)
    else:
        rw = jnp.ones((m, 1), jnp.float32)
    kernel = functools.partial(_focal_kernel, gamma=float(gamma), alpha=float(alpha),
                               use_class_weight=use_w)
    out = pl.pallas_call(
        kernel,
        out_shape=jax.ShapeDtypeStruct((1, 1), jnp.float32),
        grid=(1,),
        in_specs=[
            pl.BlockSpec(logits.shape, lambda i: (0, 0)),
            pl.BlockSpec(onehot.shape, lambda i: (0, 0)),
            pl.BlockSpec((m, 1), lambda i: (0, 0)),
        ],
        out_specs=pl.BlockSpec((1, 1), lambda i: (0, 0)),
    )(logits.astype(jnp.float32), onehot, rw)
    return out[0, 0]


def _ce_mean_kernel(logits_ref, onehot_ref, out_ref):
    ce = _ce_rowwise(logits_ref[...], onehot_ref[...])
    out_ref[...] = jnp.sum(ce, keepdims=True) * (1.0 / logits_ref.shape[0])


def cross_entropy_mean(logits, labels, num_classes):
    onehot = jax.nn.one_hot(labels, num_classes, dtype=jnp.float32)
    out = pl.pallas_call(
        _ce_mean_kernel,
        out_shape=jax.ShapeDtypeStruct((1, 1), jnp.float32),
        grid=(1,),
        in_specs=[
            pl.BlockSpec(logits.shape, lambda i: (0, 0)),
            pl.BlockSpec(onehot.shape, lambda i: (0, 0)),
        ],
        out_specs=pl.BlockSpec((1, 1), lambda i: (0, 0)),
    )(logits.astype(jnp.float32), onehot)
    return out[0, 0]


def _student_loss_kernel(s_h_ref, t_h_ref, oh_h_ref, s_t_ref, t_t_ref, oh_t_ref,
                         kd_h_ref, kd_t_ref, ce_ref, *, temperature):
    """Fused kd_head / kd_tail / CE for the is_student branch (1 launch)."""
    inv_t = 1.0 / temperature

    def kd(s_ref, t_ref):
        s = s_ref[...] * inv_t
        t = t_ref[...] * inv_t
        # student log-softmax
        sm = jnp.max(s, axis=-1, keepdims=True)
        s_lse = jnp.log(jnp.sum(jnp.exp(s - sm), axis=-1, keepdims=True)) + sm
        log_p_s = s - s_lse
        # teacher softmax / log-softmax
        tm_ = jnp.max(t, axis=-1, keepdims=True)
        t_exp = jnp.exp(t - tm_)
        t_sum = jnp.sum(t_exp, axis=-1, keepdims=True)
        p_t = t_exp * pl.reciprocal(t_sum, approx=True)
        log_p_t = (t - tm_) - jnp.log(t_sum)
        kl = p_t * (log_p_t - log_p_s)
        n_el = s.shape[0] * s.shape[1]
        # F.kl_div(..., reduction='mean') * T*T
        return jnp.sum(kl, keepdims=True) * (temperature * temperature / n_el)

    kd_h_ref[...] = kd(s_h_ref, t_h_ref)
    kd_t_ref[...] = kd(s_t_ref, t_t_ref)

    ce_sum = (jnp.sum(_ce_rowwise(s_h_ref[...], oh_h_ref[...]), keepdims=True)
              + jnp.sum(_ce_rowwise(s_t_ref[...], oh_t_ref[...]), keepdims=True))
    m_all = s_h_ref.shape[0] + s_t_ref.shape[0]
    ce_ref[...] = ce_sum * (1.0 / m_all)


def student_losses(s_head, t_head, labels_head, s_tail, t_tail, labels_tail,
                   num_classes, temperature):
    oh_h = jax.nn.one_hot(labels_head, num_classes, dtype=jnp.float32)
    oh_t = jax.nn.one_hot(labels_tail, num_classes, dtype=jnp.float32)
    ins = (s_head.astype(jnp.float32), t_head.astype(jnp.float32), oh_h,
           s_tail.astype(jnp.float32), t_tail.astype(jnp.float32), oh_t)
    kernel = functools.partial(_student_loss_kernel, temperature=float(temperature))
    kd_h, kd_t, ce = pl.pallas_call(
        kernel,
        out_shape=(jax.ShapeDtypeStruct((1, 1), jnp.float32),) * 3,
        grid=(1,),
        in_specs=[pl.BlockSpec(a.shape, lambda i: (0, 0)) for a in ins],
        out_specs=(pl.BlockSpec((1, 1), lambda i: (0, 0)),) * 3,
    )(*ins)
    return kd_h[0, 0], kd_t[0, 0], ce[0, 0]


# ----------------------------------------------------------------------------
# modeler (JAX re-implementation, parameters initialized deterministically)
# ----------------------------------------------------------------------------
class Args:
    def __init__(self):
        self.layer = "gcn"
        self.nfeat = 32
        self.nhid = 32
        self.nhead = 1
        self.dropout = 0.5        # eval mode -> identity
        self.nclass = 8
        self.sep_point = 4
        self.cls_og = "GNN"
        self.rec = False
        self.class_weight = False
        self.gamma = 2.0
        self.alpha = 0.6
        self.T = 2.0


def _glorot(key, shape):
    limit = jnp.sqrt(6.0 / (shape[0] + shape[1]))
    return jax.random.uniform(key, shape, jnp.float32, -limit, limit)


class Modeler:
    def __init__(self, args, adj, key):
        self.args = args
        self.adj = adj.astype(jnp.float32)
        keys = jax.random.split(key, 8)
        # encoder: GraphConvolution(nfeat, nhid) + relu (dropout = identity in eval)
        self.enc_w = _glorot(keys[0], (args.nfeat, args.nhid))
        self.enc_b = jnp.zeros((args.nhid,), jnp.float32)
        # original classifier
        self.classifier_og = {
            "type": args.cls_og,
            "w": _glorot(keys[1], (args.nhid, args.nclass)),
            "b": jnp.zeros((args.nclass,), jnp.float32),
        }
        # experts
        self.expert_dict = {}
        for i, sep in enumerate(["HH", "H", "TH", "T"]):
            num_class = args.sep_point if sep[0] == "H" else args.nclass - args.sep_point
            self.expert_dict[sep] = {
                "type": "GNN",
                "w": _glorot(keys[2 + i], (args.nhid, num_class)),
                "b": jnp.zeros((num_class,), jnp.float32),
            }
        # TODO(synk): reconstruction decoder (args.rec / pretrain branch) not implemented.

    # ---- sub-modules ---------------------------------------------------
    def encoder(self, features):
        return gcn_layer(features, self.enc_w, self.adj, self.enc_b, relu=True)

    def _gnn_rows(self, embed, w, b, row_idx=None):
        # Only compute the adjacency rows the losses actually consume.
        # TODO(synk): move the row gather into the kernel via scalar prefetch
        # (PrefetchScalarGridSpec) for very large idx sets.
        adj_rows = self.adj if row_idx is None else self.adj[row_idx]
        return gcn_layer(embed, w, adj_rows, b, relu=False)

    def _apply_classifier_rows(self, cls, embed, row_idx):
        if cls["type"] == "GNN":
            return self._gnn_rows(embed, cls["w"], cls["b"], row_idx)
        return linear(embed[row_idx], cls["w"], cls["b"])

    # ---- forward (mirrors the PyTorch signature / branching) -----------
    def forward(self, features, adj=None, labels=None, idx_train=None,
                classifier=None, embed=None, sep=None, teacher=None,
                pretrain=False, weight=None, is_og=False, is_expert=False,
                is_student=False):
        if embed is None:
            embed = self.encoder(features)

        if pretrain:
            # TODO(synk): decoder + adj_mse_loss reconstruction path.
            raise NotImplementedError("pretrain/reconstruction branch not implemented")

        if is_og:
            labels_tr = labels[idx_train]
            logits_tr = self._apply_classifier_rows(self.classifier_og, embed, idx_train)
            cw = weight if self.args.class_weight else None
            return focal_loss(logits_tr, labels_tr, self.args.nclass,
                              self.args.gamma, self.args.alpha, class_weight_vec=cw)

        if is_expert:
            if sep in ["T", "TH", "TT"]:
                labels = labels - self.args.sep_point
            num_class = classifier["w"].shape[1]
            logits_tr = self._apply_classifier_rows(classifier, embed, idx_train)
            return cross_entropy_mean(logits_tr, labels[idx_train], num_class)

        if is_student:
            teacher_head = teacher[sep + "H"]
            teacher_tail = teacher[sep + "T"]
            idx_h = idx_train[sep + "H"]
            idx_t = idx_train[sep + "T"]
            mh = idx_h.shape[0]
            idx_all = jnp.concatenate([idx_h, idx_t], axis=0)

            c_s = classifier["w"].shape[1]
            c_th = teacher_head["w"].shape[1]
            c_tt = teacher_tail["w"].shape[1]

            # Fuse student + teacher-head + teacher-tail classifiers into a single
            # GCN pass (one adj stream) restricted to the idx_all adjacency rows.
            w_cat = jnp.concatenate(
                [classifier["w"], teacher_head["w"], teacher_tail["w"]], axis=1)
            b_cat = jnp.concatenate(
                [classifier["b"], teacher_head["b"], teacher_tail["b"]], axis=0)
            fused = self._gnn_rows(embed, w_cat, b_cat, idx_all)

            s_all = fused[:, :c_s]                       # student logits at idx_all
            s_head = s_all[:mh]
            s_tail = s_all[mh:]
            t_head_out = fused[:mh, c_s:c_s + c_th]      # teacher-head at idx_h
            t_tail_out = fused[mh:, c_s + c_th:c_s + c_th + c_tt]  # teacher-tail at idx_t

            if sep in ["T", "TH", "TT"]:
                labels = labels - self.args.sep_point

            kd_head, kd_tail, ce = student_losses(
                s_head, t_head_out, labels[idx_h],
                s_tail, t_tail_out, labels[idx_t],
                c_s, self.args.T)
            return kd_head, kd_tail, ce


# ----------------------------------------------------------------------------
# demo
# ----------------------------------------------------------------------------
def _build_adj(key, n):
    a = (jax.random.uniform(key, (n, n)) > 0.85).astype(jnp.float32)
    a = jnp.maximum(a, a.T) + jnp.eye(n, dtype=jnp.float32)
    d = jnp.sum(a, axis=1)
    d_inv_sqrt = 1.0 / jnp.sqrt(d)
    return a * d_inv_sqrt[:, None] * d_inv_sqrt[None, :]


if __name__ == "__main__":
    args = Args()
    N = 64
    key = jax.random.PRNGKey(0)
    k_feat, k_adj, k_lab, k_param = jax.random.split(key, 4)

    features = jax.random.normal(k_feat, (N, args.nfeat), jnp.float32)
    adj = _build_adj(k_adj, N)
    labels = jax.random.randint(k_lab, (N,), 0, args.nclass)
    idx_train = jnp.arange(16, dtype=jnp.int32)

    model = Modeler(args, adj, k_param)

    # 1) is_og branch (focal node-classification loss)
    loss_og = model.forward(features, labels=labels, idx_train=idx_train, is_og=True)

    # 2) is_expert branch (head expert, labels restricted to [0, sep_point))
    labels_head = labels % args.sep_point
    loss_expert = model.forward(
        features, labels=labels_head, idx_train=idx_train,
        classifier=model.expert_dict["HH"], sep="HH", is_expert=True)

    # 3) is_student branch (knowledge distillation, sep='H')
    teacher = {"HH": model.expert_dict["HH"], "HT": model.expert_dict["H"]}
    idx_train_dict = {"HH": jnp.arange(0, 8, dtype=jnp.int32),
                      "HT": jnp.arange(8, 16, dtype=jnp.int32)}
    kd_head, kd_tail, ce_student = model.forward(
        features, labels=labels_head, idx_train=idx_train_dict,
        classifier=model.expert_dict["H"], sep="H", teacher=teacher,
        is_student=True)

    results = jax.block_until_ready(
        (loss_og, loss_expert, kd_head, kd_tail, ce_student))
    assert all(bool(jnp.isfinite(r)) for r in results)
    print("KERNEL_OK")
</pallas_src>

<mosaic_0001>
module attributes {stable_mosaic.version = 11 : i64} {
  func.func @_gcn_layer_kernel(%arg0: i32, %arg1: memref<64x32xf32, #tpu.memory_space<vmem>>, %arg2: memref<32x128xf32, #tpu.memory_space<vmem>>, %arg3: memref<64x64xbf16, #tpu.memory_space<vmem>>, %arg4: memref<1x128xf32, #tpu.memory_space<vmem>>, %arg5: memref<64x128xf32, #tpu.memory_space<vmem>>, %arg6: memref<64x128xbf16, #tpu.memory_space<vmem>>) attributes {dimension_semantics = [#tpu.dimension_semantics<arbitrary>], iteration_bounds = array<i64: 1>, scalar_prefetch = 0 : i64, scratch_operands = 1 : i64, tpu.core_type = #tpu.core_type<tc>, window_params = [{pipeline_mode = #tpu.pipeline_mode<synchronous>, transform_indices = @transform_0, window_bounds = array<i64: 64, 32>}, {pipeline_mode = #tpu.pipeline_mode<synchronous>, transform_indices = @transform_1, window_bounds = array<i64: 32, 128>}, {transform_indices = @transform_2, window_bounds = array<i64: 64, 64>}, {pipeline_mode = #tpu.pipeline_mode<synchronous>, transform_indices = @transform_3, window_bounds = array<i64: 1, 128>}, {transform_indices = @transform_4, window_bounds = array<i64: 64, 128>}]} {
    %c0_i32 = arith.constant 0 : i32
    %0 = arith.cmpi eq, %arg0, %c0_i32 : i32
    %1 = arith.extui %0 : i1 to i32
    %c0_i32_0 = arith.constant 0 : i32
    %2 = arith.cmpi ne, %1, %c0_i32_0 : i32
    scf.if %2 {
      %c0_9 = arith.constant 0 : index
      %c0_10 = arith.constant 0 : index
      %12 = vector.load %arg1[%c0_9, %c0_10] : memref<64x32xf32, #tpu.memory_space<vmem>>, vector<64x32xf32>
      %13 = arith.truncf %12 : vector<64x32xf32> to vector<64x32xbf16>
      %c0_11 = arith.constant 0 : index
      %c0_12 = arith.constant 0 : index
      %14 = vector.load %arg2[%c0_11, %c0_12] : memref<32x128xf32, #tpu.memory_space<vmem>>, vector<32x128xf32>
      %15 = arith.truncf %14 : vector<32x128xf32> to vector<32x128xbf16>
      %cst_13 = arith.constant dense<0.000000e+00> : vector<64x128xf32>
      %16 = tpu.matmul %13, %15, %cst_13 {dimension_numbers = #tpu.dot_dimension_numbers<[1], [0], [0], [1], [0, 0, 1, 1], [], []>} : vector<64x32xbf16>, vector<32x128xbf16>, vector<64x128xf32> -> vector<64x128xf32>
      %17 = arith.truncf %16 : vector<64x128xf32> to vector<64x128xbf16>
      %c0_14 = arith.constant 0 : index
      %c0_15 = arith.constant 0 : index
      %18 = vector.load %arg6[%c0_14, %c0_15] : memref<64x128xbf16, #tpu.memory_space<vmem>>, vector<64x128xbf16>
      tpu.vector_store %arg6[%c0_14, %c0_15], %17 {strides = array<i32>} : memref<64x128xbf16, #tpu.memory_space<vmem>>, vector<64x128xbf16>,
    } else {
    }
    %c0 = arith.constant 0 : index
    %c0_1 = arith.constant 0 : index
    %3 = vector.load %arg3[%c0, %c0_1] : memref<64x64xbf16, #tpu.memory_space<vmem>>, vector<64x64xbf16>
    %c0_2 = arith.constant 0 : index
    %c0_3 = arith.constant 0 : index
    %4 = vector.load %arg6[%c0_2, %c0_3] : memref<64x128xbf16, #tpu.memory_space<vmem>>, vector<64x128xbf16>
    %cst = arith.constant dense<0.000000e+00> : vector<64x128xf32>
    %5 = tpu.matmul %3, %4, %cst {dimension_numbers = #tpu.dot_dimension_numbers<[1], [0], [0], [1], [0, 0, 1, 1], [], []>} : vector<64x64xbf16>, vector<64x128xbf16>, vector<64x128xf32> -> vector<64x128xf32>
    %c0_4 = arith.constant 0 : index
    %c0_5 = arith.constant 0 : index
    %6 = vector.load %arg4[%c0_4, %c0_5] : memref<1x128xf32, #tpu.memory_space<vmem>>, vector<1x128xf32>
    %7 = vector.broadcast %6 : vector<1x128xf32> to vector<64x128xf32>
    %8 = arith.addf %5, %7 : vector<64x128xf32>
    %cst_6 = arith.constant 0.000000e+00 : f32
    %9 = vector.broadcast %cst_6 : f32 to vector<64x128xf32>
    %10 = arith.maximumf %8, %9 : vector<64x128xf32>
    %c0_7 = arith.constant 0 : index
    %c0_8 = arith.constant 0 : index
    %11 = vector.load %arg5[%c0_7, %c0_8] : memref<64x128xf32, #tpu.memory_space<vmem>>, vector<64x128xf32>
    tpu.vector_store %arg5[%c0_7, %c0_8], %10 {strides = array<i32>} : memref<64x128xf32, #tpu.memory_space<vmem>>, vector<64x128xf32>,
    return
  }
  func.func @transform_0(%arg0: i32) -> (i32, i32) {
    %c0_i32 = arith.constant 0 : i32
    %c0_i32_0 = arith.constant 0 : i32
    %c0_i32_1 = arith.constant 0 : i32
    return %c0_i32, %c0_i32_0 : i32, i32
  }
  func.func @transform_1(%arg0: i32) -> (i32, i32) {
    %c0_i32 = arith.constant 0 : i32
    %c0_i32_0 = arith.constant 0 : i32
    %c0_i32_1 = arith.constant 0 : i32
    return %c0_i32, %c0_i32_0 : i32, i32
  }
  func.func @transform_2(%arg0: i32) -> (i32, i32) {
    %c0_i32 = arith.constant 0 : i32
    %c0_i32_0 = arith.constant 0 : i32
    return %arg0, %c0_i32 : i32, i32
  }
  func.func @transform_3(%arg0: i32) -> (i32, i32) {
    %c0_i32 = arith.constant 0 : i32
    %c0_i32_0 = arith.constant 0 : i32
    %c0_i32_1 = arith.constant 0 : i32
    return %c0_i32, %c0_i32_0 : i32, i32
  }
  func.func @transform_4(%arg0: i32) -> (i32, i32) {
    %c0_i32 = arith.constant 0 : i32
    %c0_i32_0 = arith.constant 0 : i32
    return %arg0, %c0_i32 : i32, i32
  }
}

</mosaic_0001>

<bundles_post_ra>
// kernel: tpu_custom_call.1
= control target key start
LH: loop header
LB: loop body
LE: loop exit
PB: predicated region body
PF: predicated region fallthrough
CT: control target
= control target key end

     0   :  { %s428_s0 = inlined_call_operand.vmem [shape: f32[64,32], index: 0, kind: input, shape index: {}]   ;;  %s429_s1 = inlined_call_operand.vmem [shape: f32[32,128], index: 1, kind: input, shape index: {}]   ;;  %s430_s2 = inlined_call_operand.vmem [shape: bf16[64,64], index: 2, kind: input, shape index: {}]   ;;  %s431_s3 = inlined_call_operand.vmem [shape: f32[1,128], index: 3, kind: input, shape index: {}]   ;;  %s432_s4 = inlined_call_operand.hbm [shape: f32[64,128], index: 4, kind: output, shape index: {}]  }
   0x1   :  { %v37_v0 = vld [vmem:[%s429_s1 + $0x10] sm:$0xff]  ;;  %v38_v1 = vld [vmem:[%s429_s1 + $0x18] sm:$0xff]  ;;  %v35_v2 = vld [vmem:[%s429_s1] sm:$0xff] }
   0x2   :  { %v40_v3 = vpack.c.bf16 %v38_v1, %v37_v0  ;;  %v36_v4 = vld [vmem:[%s429_s1 + $0x8] sm:$0xff]  ;;  %v25_v5 = vld [vmem:[%s428_s0 + $0x10] sm:$0xff]  ;;  %v26_v7 = vld [vmem:[%s428_s0 + $0x18] sm:$0xff] }
   0x3   :  { %v39_v6 = vpack.c.bf16 %v36_v4, %v35_v2 }
   0x4   :  { %310 = vmatpush.bf16.msra.mxu3 %v40_v3  ;;  %60 = vmatpush.bf16.msra.mxu0 %v40_v3 }
   0x5   :  { %9 = vsyncpa [#allocation4], 0  ;;  %v32_v8 = vpack.c.bf16 %v26_v7, %v25_v5  ;;  %vm41_vm0 = vcmask 261120   ;;  %v23_v9 = vld [vmem:[%s428_s0] sm:$0xff]  ;;  %v24_v10 = vld [vmem:[%s428_s0 + $0x8] sm:$0xff]  ;;  %vm163_vm1 = vcmask 523264  }
   0x6   :  { %v31_v11 = vpack.c.bf16 %v24_v10, %v23_v9  ;;  %v27_v12 = vld [vmem:[%s428_s0 + $0x20] sm:$0xff]  ;;  %v28_v13 = vld [vmem:[%s428_s0 + $0x28] sm:$0xff]  ;;  %v29_v15 = vld [vmem:[%s428_s0 + $0x30] sm:$0xff]  ;;  %s227_s23 = sshll.u32 %s432_s4, 4  ;;  %s347_s24 = smov 128   ;;  %s228_s23 = int_to_ptr.hbm [resolvable:$true] %s227_s23 }
   0x7   :  { %v33_v14 = vpack.c.bf16 %v28_v13, %v27_v12  ;;  %v30_v16 = vld [vmem:[%s428_s0 + $0x38] sm:$0xff]  ;;  %v279_v34 = vld [vmem:[%s430_s2] sm:$0xff]  ;;  %v281_v35 = vld [vmem:[%s430_s2 + $0x10] sm:$0xff]  ;;  %s348_s25 = smov 8  }
   0x8   :  { %311 = vmatpush.bf16.msra.mxu3 %v39_v6  ;;  %61 = vmatpush.bf16.msra.mxu0 %v39_v6  ;;  %v34_v17 = vpack.c.bf16 %v30_v16, %v29_v15  ;;  %v280_v36 = vld [vmem:[%s430_s2 + $0x8] sm:$0xff]  ;;  %v282_v37 = vld [vmem:[%s430_s2 + $0x18] sm:$0xff]  ;;  %v319_v38 = vld [vmem:[%s431_s3] ss:$0 sm:$0xff]  ;;  %s346_s2 = smov [#allocation3]  }
   0x9   :  { %s225_s3 = sshll.u32 %s346_s2, 4  ;;  %s226_s3 = int_to_ptr.vmem [resolvable:$true] %s225_s3 }
   0xb   :  { %240 = vmatmul.msk.bf16.vlgmr.msra.gmra.mxu3 %vm41_vm0, %v32_v8  ;;  %239 = vmatmul.msk.bf16.vlgmr.msra.gmra.mxu0 %vm41_vm0, %v31_v11 }
  0x1b   :  { %241 = vmatmul.msk.bf16.gmra.mxu3 %vm41_vm0, %v33_v14 }
  0x2b   :  { %242 = vmatmul.msk.bf16.gmra.mxu3 %vm41_vm0, %v34_v17 }
  0x88   :  { %v63_v19 = vpop.f32.mrf.mxu0 }
  0x8e   :  { %v68_v18 = vpop.f32.mrf.mxu3 }
  0x90   :  { %v65_v22 = vpop.f32.mrf.mxu0 }
  0x91   :  { %v290_v23 = vpack.c.bf16 %v65_v22, %v63_v19 }
  0x93   :  { %291 = vst [vmem:[#allocation2 + $0x10] sm:$0xff] %v290_v23  }
  0x96   :  { %v70_v20 = vpop.f32.mrf.mxu3 }
  0x97   :  { %v295_v21 = vpack.c.bf16 %v70_v20, %v68_v18 }
  0x99   :  { %307 = vst [vmem:[#allocation2] sm:$0xff] %v295_v21  }
  0x9a   :  { %v283_v33 = vld [vmem:[#allocation2 + $0x10] sm:$0xff] }
  0x9e   :  { %v73_v24 = vpop.f32.mrf.mxu3 }
  0xa0   :  { %v284_v32 = vld [vmem:[#allocation2] sm:$0xff] }
  0xa6   :  { %v75_v25 = vpop.f32.mrf.mxu3 }
  0xa7   :  { %v300_v26 = vpack.c.bf16 %v75_v25, %v73_v24 }
  0xa9   :  { %308 = vst [vmem:[#allocation2 + $0x18] sm:$0xff] %v300_v26  }
  0xae   :  { %v78_v27 = vpop.f32.mrf.mxu3 }
  0xb0   :  { %v285_v31 = vld [vmem:[#allocation2 + $0x18] sm:$0xff] }
  0xb6   :  { %v80_v28 = vpop.f32.mrf.mxu3 }
  0xb7   :  { %v305_v29 = vpack.c.bf16 %v80_v28, %v78_v27 }
  0xb9   :  { %309 = vst [vmem:[#allocation2 + $0x8] sm:$0xff] %v305_v29  }
  0xc0   :  { %v286_v30 = vld [vmem:[#allocation2 + $0x8] sm:$0xff] }
  0xc1   :  { %180 = vmatpush.bf16.msra.mxu1 %v286_v30  ;;  %312 = vmatpush.bf16.msra.mxu2 %v286_v30 }
  0xc5   :  { %181 = vmatpush.bf16.msra.mxu1 %v285_v31  ;;  %313 = vmatpush.bf16.msra.mxu2 %v285_v31 }
  0xc9   :  { %182 = vmatpush.bf16.msra.mxu1 %v284_v32  ;;  %314 = vmatpush.bf16.msra.mxu2 %v284_v32 }
  0xcd   :  { %183 = vmatpush.bf16.msra.mxu1 %v283_v33  ;;  %315 = vmatpush.bf16.msra.mxu2 %v283_v33 }
  0xd0   :  { %275 = vmatmul.msk.bf16.vlgmr.msra.gmra.mxu1 %vm163_vm1, %v279_v34  ;;  %277 = vmatmul.msk.bf16.vlgmr.msra.gmra.mxu2 %vm163_vm1, %v281_v35 }
  0xe0   :  { %276 = vmatmul.msk.bf16.gmra.mxu1 %vm163_vm1, %v280_v36  ;;  %278 = vmatmul.msk.bf16.gmra.mxu2 %vm163_vm1, %v282_v37 }
 0x14d   :  { %v185_v39 = vpop.f32.mrf.mxu1 }
 0x14e   :  { %v186_v40 = vadd.f32 %v319_v38, %v185_v39 }
 0x150   :  { %v205_v41 = vmax.f32 %v186_v40, 0.0 }
 0x152   :  { %213 = vst [vmem:[#allocation3] sm:$0xff] %v205_v41 }
 0x153   :  { %v195_v42 = vpop.f32.mrf.mxu2 }
 0x154   :  { %v196_v43 = vadd.f32 %v319_v38, %v195_v42 }
 0x155   :  { %v187_v44 = vpop.f32.mrf.mxu1 }
 0x156   :  { %v209_v45 = vmax.f32 %v196_v43, 0.0  ;;  %v188_v46 = vadd.f32 %v319_v38, %v187_v44 }
 0x158   :  { %217 = vst [vmem:[#allocation3 + $0x20] sm:$0xff] %v209_v45  ;;  %v206_v47 = vmax.f32 %v188_v46, 0.0 }
 0x15a   :  { %214 = vst [vmem:[#allocation3 + $0x8] sm:$0xff] %v206_v47 }
 0x15b   :  { %v197_v48 = vpop.f32.mrf.mxu2 }
 0x15c   :  { %v198_v49 = vadd.f32 %v319_v38, %v197_v48 }
 0x15d   :  { %v190_v50 = vpop.f32.mrf.mxu1 }
 0x15e   :  { %v210_v51 = vmax.f32 %v198_v49, 0.0  ;;  %v191_v52 = vadd.f32 %v319_v38, %v190_v50 }
 0x160   :  { %218 = vst [vmem:[#allocation3 + $0x28] sm:$0xff] %v210_v51  ;;  %v207_v53 = vmax.f32 %v191_v52, 0.0 }
 0x162   :  { %215 = vst [vmem:[#allocation3 + $0x10] sm:$0xff] %v207_v53 }
 0x163   :  { %v200_v54 = vpop.f32.mrf.mxu2 }
 0x164   :  { %v201_v55 = vadd.f32 %v319_v38, %v200_v54 }
 0x165   :  { %v192_v56 = vpop.f32.mrf.mxu1 }
 0x166   :  { %v211_v57 = vmax.f32 %v201_v55, 0.0  ;;  %v193_v58 = vadd.f32 %v319_v38, %v192_v56 }
 0x168   :  { %219 = vst [vmem:[#allocation3 + $0x30] sm:$0xff] %v211_v57  ;;  %v208_v59 = vmax.f32 %v193_v58, 0.0 }
 0x16a   :  { %216 = vst [vmem:[#allocation3 + $0x18] sm:$0xff] %v208_v59 }
 0x16b   :  { %v202_v60 = vpop.f32.mrf.mxu2 }
 0x16c   :  { %v203_v61 = vadd.f32 %v319_v38, %v202_v60 }
 0x16e   :  { %v212_v62 = vmax.f32 %v203_v61, 0.0 }
 0x170   :  { %220 = vst [vmem:[#allocation3 + $0x38] sm:$0xff] %v212_v62 }
 0x171   :  { %233 = dma.vmem_to_hbm [thread:$0]  %s226_s3, 1024, %s228_s23, [#allocation4], %s347_s24, %s347_s24, %s348_s25  }
 0x172   :  { %344 = dma.done.wait [#allocation4], 1024  }
 0x173   :  { %345 = vsyncadd [#allocation4], 4294966272 }
 0x174   :  { %238 = vsyncpa [#allocation4], 1 }

</bundles_post_ra>
